<compile_context>
chip_gen: v5e
topology: v5e:2x2
jax: 0.10.0
libtpu: 0.0.40
codegen_flags: <defaults>
</compile_context>

<pallas_src>
import functools

import jax
import jax.numpy as jnp
from jax.experimental import pallas as pl
from jax.experimental.pallas import tpu as pltpu

LANE = 128
ROW_ALIGN = 16  # bf16 packs 2 rows / sublane -> row tiles in multiples of 16


def _round_up(x, m):
    return ((x + m - 1) // m) * m


def _tpu_defaults():
    """Per-generation row-tile default and scoped-VMEM cap."""
    kind = ""
    try:
        kind = jax.devices()[0].device_kind.lower()
    except Exception:
        pass
    vmem_phys = None
    try:
        vmem_phys = int(pltpu.get_tpu_info().vmem_capacity_bytes)
    except Exception:
        pass
    if vmem_phys is None:
        vmem_phys = 64 * 1024 * 1024 if "v7" in kind else 128 * 1024 * 1024
    # v5e (128x128 MXU): 128-row tiles; v6e/v7x (2x256^2 MXU): 256-row tiles.
    tile_m = 256 if ("v6" in kind or "v7" in kind) else 128
    # Leave headroom under physical VMEM for Mosaic internal scratch.
    vmem_cap = max(min(vmem_phys - 8 * 1024 * 1024, 100 * 1024 * 1024),
                   16 * 1024 * 1024)
    return tile_m, vmem_cap


def _resident_spec(shape):
    """Full block with constant index_map -> one resident buffer is enough."""
    try:
        return pl.BlockSpec(shape, lambda i, j: (0, 0),
                            pipeline_mode=pl.Buffered(1))
    except TypeError:  # older BlockSpec without pipeline_mode
        return pl.BlockSpec(shape, lambda i, j: (0, 0))


def _mlp_kernel(num_layers, compute_dtype, x_ref, *refs):
    has_hidden = num_layers > 1
    if has_hidden:
        hid_ref = refs[-1]
        out_ref = refs[-2]
        param_refs = refs[:-2]
    else:
        out_ref = refs[-1]
        param_refs = refs[:-1]

    def run_hidden(h):
        for i in range(num_layers - 1):
            w = param_refs[2 * i][...]                       # bf16 (in_pad, out_pad)
            b = param_refs[2 * i + 1][...]                   # f32  (1,    out_pad)
            acc = jnp.dot(h, w, preferred_element_type=jnp.float32) + b
            h = jnp.maximum(acc, 0.0).astype(compute_dtype)  # ReLU, then bf16
        return h

    if has_hidden:
        # Hidden stack depends only on the row tile; compute it at the first N
        # tile and reuse the cached bf16 activation for the remaining N tiles.
        @pl.when(pl.program_id(1) == 0)
        def _():
            hid_ref[...] = run_hidden(x_ref[...])
        h_last = hid_ref[...]
    else:
        h_last = x_ref[...]                                  # bf16 row tile

    w = param_refs[-2][...]                                  # bf16 (in_pad, tile_n)
    b = param_refs[-1][...]                                  # f32  (1,      tile_n)
    acc = jnp.dot(h_last, w, preferred_element_type=jnp.float32) + b
    out_ref[...] = acc.astype(out_ref.dtype)


def prepare_mlp_params(weights, biases, *, param_dtype=jnp.bfloat16):
    """Pad feature dims to multiples of 128 and cast weights to bf16 ONCE
    (hoisted out of the per-call path).

    weights[i]: (in_i, out_i)   -- transposed nn.Linear weight
    biases[i]:  (1, out_i) or (out_i,)
    """
    dims_in = [int(w.shape[0]) for w in weights]
    dims_out = [int(w.shape[1]) for w in weights]
    ws, bs = [], []
    for w, b, di, do in zip(weights, biases, dims_in, dims_out):
        pi, po = _round_up(di, LANE), _round_up(do, LANE)
        ws.append(jnp.pad(w.astype(param_dtype), ((0, pi - di), (0, po - do))))
        bs.append(jnp.pad(jnp.reshape(b, (1, -1)).astype(jnp.float32),
                          ((0, 0), (0, po - do))))
    return {"weights": ws, "biases": bs,
            "in_dim": dims_in[0], "out_dim": dims_out[-1]}


def mlp_pallas(x, params, *, tile_m=None, tile_n=2048, out_dtype=None,
               compute_dtype=jnp.bfloat16):
    """Fused MLP forward.  x: (..., input_dim); params from prepare_mlp_params."""
    weights, biases = params["weights"], params["biases"]
    in_dim, out_dim = params["in_dim"], params["out_dim"]
    num_layers = len(weights)
    has_hidden = num_layers > 1

    default_tile_m, vmem_cap = _tpu_defaults()
    if tile_m is None:
        tile_m = default_tile_m
    if out_dtype is None:
        out_dtype = jnp.bfloat16 if x.dtype == jnp.bfloat16 else jnp.float32

    pad_in = [int(w.shape[0]) for w in weights]    # already multiples of 128
    pad_out = [int(w.shape[1]) for w in weights]

    orig_shape = x.shape
    x2 = x.reshape(-1, in_dim)
    M = x2.shape[0]

    # Row tiling (bf16 input -> multiples of 16).
    tile_m_eff = min(tile_m, _round_up(M, ROW_ALIGN))
    tile_m_eff = max(ROW_ALIGN, _round_up(tile_m_eff, ROW_ALIGN))
    m_pad = _round_up(M, tile_m_eff)
    m_tiles = m_pad // tile_m_eff

    # Output-column tiling for the final (large) layer.
    out_pad = pad_out[-1]
    tile_n_eff = min(_round_up(tile_n, LANE), out_pad)
    while out_pad % tile_n_eff != 0:                # keep it an even divisor
        tile_n_eff -= LANE
    n_tiles = out_pad // tile_n_eff

    # Pad + cast the input in one op (lane-dense, bf16 at the kernel boundary).
    x_p = jnp.pad(x2.astype(compute_dtype),
                  ((0, m_pad - M), (0, pad_in[0] - in_dim)))

    in_specs = [pl.BlockSpec((tile_m_eff, pad_in[0]), lambda i, j: (i, 0))]
    args = [x_p]
    hidden_param_bytes = 0
    for li in range(num_layers - 1):               # resident hidden layers
        w, b = weights[li], biases[li]
        in_specs.append(_resident_spec(w.shape))
        in_specs.append(_resident_spec(b.shape))
        args.extend([w, b])
        hidden_param_bytes += (int(w.size) * w.dtype.itemsize
                               + int(b.size) * b.dtype.itemsize)

    w_last, b_last = weights[-1], biases[-1]       # N-tiled final layer
    if n_tiles == 1:
        in_specs.append(_resident_spec(w_last.shape))
        in_specs.append(_resident_spec(b_last.shape))
        last_bufs = 1
    else:
        in_specs.append(pl.BlockSpec((pad_in[-1], tile_n_eff), lambda i, j: (0, j)))
        in_specs.append(pl.BlockSpec((1, tile_n_eff), lambda i, j: (0, j)))
        last_bufs = 2
    args.extend([w_last, b_last])

    out_specs = pl.BlockSpec((tile_m_eff, tile_n_eff), lambda i, j: (i, j))
    scratch_shapes = ([pltpu.VMEM((tile_m_eff, pad_in[-1]), compute_dtype)]
                      if has_hidden else [])
    # Hidden-activation scratch requires the N axis to run in order per row tile.
    dim_sem = ("parallel", "arbitrary") if has_hidden else ("parallel", "parallel")

    cdt = jnp.dtype(compute_dtype).itemsize
    odt = jnp.dtype(out_dtype).itemsize
    param_bytes = sum(int(w.size) * w.dtype.itemsize + int(b.size) * b.dtype.itemsize
                      for w, b in zip(weights, biases))
    flops = 2 * m_pad * sum(pi * po for pi, po in zip(pad_in, pad_out))
    cost = pl.CostEstimate(flops=flops, transcendentals=0,
                           bytes_accessed=int(x_p.size) * cdt + param_bytes
                                          + m_pad * out_pad * odt)

    # Accurate VMEM accounting: bf16 x double-buffer, out double-buffer at real
    # dtype, single-buffered resident params, N-tiled last layer, scratch, plus
    # f32 accumulator headroom.  Request need*1.3, capped per generation.
    max_feat = max(pad_in + pad_out)
    vmem_needed = (
        2 * tile_m_eff * pad_in[0] * cdt
        + 2 * tile_m_eff * tile_n_eff * odt
        + hidden_param_bytes
        + last_bufs * (pad_in[-1] * tile_n_eff * cdt + 8 * tile_n_eff * 4)
        + (tile_m_eff * pad_in[-1] * cdt if has_hidden else 0)
        + 2 * tile_m_eff * max(tile_n_eff, max_feat) * 4
    )
    vmem_limit = int(min(max(int(vmem_needed * 1.3), 8 * 1024 * 1024), vmem_cap))

    kernel = functools.partial(_mlp_kernel, num_layers, compute_dtype)
    out_p = pl.pallas_call(
        kernel,
        out_shape=jax.ShapeDtypeStruct((m_pad, out_pad), out_dtype),
        grid_spec=pltpu.PrefetchScalarGridSpec(
            num_scalar_prefetch=0,
            grid=(m_tiles, n_tiles),
            in_specs=in_specs,
            out_specs=out_specs,
            scratch_shapes=scratch_shapes,
        ),
        compiler_params=pltpu.CompilerParams(
            dimension_semantics=dim_sem,
            vmem_limit_bytes=vmem_limit,
        ),
        cost_estimate=cost,
    )(*args)

    out = out_p[:M, :out_dim]
    return out.reshape(orig_shape[:-1] + (out_dim,)).astype(x.dtype)


def init_mlp_params(key, input_dim, hidden_dim, output_dim, num_layers):
    """Deterministic init matching MLP/nn.Linear shapes (weight stored transposed)."""
    h = [hidden_dim] * (num_layers - 1)
    dims_in = [input_dim] + h
    dims_out = h + [output_dim]
    weights, biases = [], []
    for n_in, n_out in zip(dims_in, dims_out):
        key, kw, kb = jax.random.split(key, 3)
        bound = 1.0 / jnp.sqrt(n_in)  # PyTorch default uniform bound
        w = jax.random.uniform(kw, (n_in, n_out), jnp.float32, -bound, bound)
        b = jax.random.uniform(kb, (1, n_out), jnp.float32, -bound, bound)
        weights.append(w)
        biases.append(b)
    return weights, biases


def mlp_reference(x, weights, biases):
    h = x
    n = len(weights)
    for i, (w, b) in enumerate(zip(weights, biases)):
        h = h @ w + b
        if i < n - 1:
            h = jnp.maximum(h, 0.0)
    return h


if __name__ == "__main__":
    key = jax.random.PRNGKey(0)

    # Caption: transformer output hs (after permute(1,0,2)) has shape
    # (batch, seq, hidden_dim); mlp1 = MLP(hidden_dim, 512, vocab_size, 1),
    # i.e. a single Linear(hidden_dim -> vocab_size). Small demo shapes.
    batch, seq, hidden_dim, vocab_size = 2, 8, 32, 48

    key, kx = jax.random.split(key)
    hs = jax.random.normal(kx, (batch, seq, hidden_dim), jnp.float32)

    # --- Caption.mlp1 (num_layers=1: single Linear) ---
    key, k1 = jax.random.split(key)
    w1, b1 = init_mlp_params(k1, hidden_dim, 512, vocab_size, 1)
    p1 = prepare_mlp_params(w1, b1)
    out = jax.block_until_ready(mlp_pallas(hs, p1))
    ref = mlp_reference(hs, w1, b1)
    assert out.shape == (batch, seq, vocab_size)
    # bf16 MXU inputs with f32 accumulation -> loosened tolerance vs f32 ref.
    assert jnp.allclose(out, ref, atol=2e-2, rtol=2e-2), "mlp1 mismatch vs reference"

    # --- Multi-layer MLP path (fused ReLU + hidden-activation scratch) ---
    key, k2 = jax.random.split(key)
    w3, b3 = init_mlp_params(k2, hidden_dim, 64, vocab_size, 3)
    p3 = prepare_mlp_params(w3, b3)
    out3 = jax.block_until_ready(mlp_pallas(hs, p3))
    ref3 = mlp_reference(hs, w3, b3)
    assert out3.shape == (batch, seq, vocab_size)
    assert jnp.allclose(out3, ref3, atol=2e-2, rtol=2e-2), "3-layer MLP mismatch"

    # --- Multi N-tile path (output columns tiled, scratch reuse across j) ---
    key, k4 = jax.random.split(key)
    vocab_big = 300
    w4, b4 = init_mlp_params(k4, hidden_dim, 64, vocab_big, 2)
    p4 = prepare_mlp_params(w4, b4)
    out4 = jax.block_until_ready(mlp_pallas(hs, p4, tile_n=128))
    ref4 = mlp_reference(hs, w4, b4)
    assert out4.shape == (batch, seq, vocab_big)
    assert jnp.allclose(out4, ref4, atol=2e-2, rtol=2e-2), "N-tiled MLP mismatch"

    print("KERNEL_OK")
</pallas_src>

<mosaic_0001>
module attributes {stable_mosaic.version = 11 : i64} {
  func.func @_mlp_kernel(%arg0: i32, %arg1: i32, %arg2: memref<16x128xbf16, #tpu.memory_space<vmem>>, %arg3: memref<128x128xbf16, #tpu.memory_space<vmem>>, %arg4: memref<1x128xf32, #tpu.memory_space<vmem>>, %arg5: memref<16x128xf32, #tpu.memory_space<vmem>>) attributes {dimension_semantics = [#tpu.dimension_semantics<parallel>, #tpu.dimension_semantics<parallel>], iteration_bounds = array<i64: 1, 1>, scalar_prefetch = 0 : i64, scratch_operands = 0 : i64, tpu.core_type = #tpu.core_type<tc>, window_params = [{transform_indices = @transform_0, window_bounds = array<i64: 16, 128>}, {pipeline_mode = #tpu.pipeline_mode<synchronous>, transform_indices = @transform_1, window_bounds = array<i64: 128, 128>}, {pipeline_mode = #tpu.pipeline_mode<synchronous>, transform_indices = @transform_2, window_bounds = array<i64: 1, 128>}, {transform_indices = @transform_3, window_bounds = array<i64: 16, 128>}]} {
    %c0 = arith.constant 0 : index
    %c0_0 = arith.constant 0 : index
    %0 = vector.load %arg2[%c0, %c0_0] : memref<16x128xbf16, #tpu.memory_space<vmem>>, vector<16x128xbf16>
    %c0_1 = arith.constant 0 : index
    %c0_2 = arith.constant 0 : index
    %1 = vector.load %arg3[%c0_1, %c0_2] : memref<128x128xbf16, #tpu.memory_space<vmem>>, vector<128x128xbf16>
    %c0_3 = arith.constant 0 : index
    %c0_4 = arith.constant 0 : index
    %2 = vector.load %arg4[%c0_3, %c0_4] : memref<1x128xf32, #tpu.memory_space<vmem>>, vector<1x128xf32>
    %cst = arith.constant dense<0.000000e+00> : vector<16x128xf32>
    %3 = tpu.matmul %0, %1, %cst {dimension_numbers = #tpu.dot_dimension_numbers<[1], [0], [0], [1], [0, 0, 1, 1], [], []>} : vector<16x128xbf16>, vector<128x128xbf16>, vector<16x128xf32> -> vector<16x128xf32>
    %4 = vector.broadcast %2 : vector<1x128xf32> to vector<16x128xf32>
    %5 = arith.addf %3, %4 : vector<16x128xf32>
    %c0_5 = arith.constant 0 : index
    %c0_6 = arith.constant 0 : index
    %6 = vector.load %arg5[%c0_5, %c0_6] : memref<16x128xf32, #tpu.memory_space<vmem>>, vector<16x128xf32>
    tpu.vector_store %arg5[%c0_5, %c0_6], %5 {strides = array<i32>} : memref<16x128xf32, #tpu.memory_space<vmem>>, vector<16x128xf32>,
    return
  }
  func.func @transform_0(%arg0: i32, %arg1: i32) -> (i32, i32) {
    %c0_i32 = arith.constant 0 : i32
    %c0_i32_0 = arith.constant 0 : i32
    return %arg0, %c0_i32 : i32, i32
  }
  func.func @transform_1(%arg0: i32, %arg1: i32) -> (i32, i32) {
    %c0_i32 = arith.constant 0 : i32
    %c0_i32_0 = arith.constant 0 : i32
    %c0_i32_1 = arith.constant 0 : i32
    return %c0_i32, %c0_i32_0 : i32, i32
  }
  func.func @transform_2(%arg0: i32, %arg1: i32) -> (i32, i32) {
    %c0_i32 = arith.constant 0 : i32
    %c0_i32_0 = arith.constant 0 : i32
    %c0_i32_1 = arith.constant 0 : i32
    return %c0_i32, %c0_i32_0 : i32, i32
  }
  func.func @transform_3(%arg0: i32, %arg1: i32) -> (i32, i32) {
    %c0_i32 = arith.constant 0 : i32
    return %arg0, %arg1 : i32, i32
  }
}

</mosaic_0001>

<bundles_post_ra>
// kernel: tpu_custom_call.1
= control target key start
LH: loop header
LB: loop body
LE: loop exit
PB: predicated region body
PF: predicated region fallthrough
CT: control target
= control target key end

     0   :  { %8 = vsyncpa [#allocation3], 0  ;;  %s329_s0 = inlined_call_operand.hbm [shape: bf16[16,128], index: 0, kind: input, shape index: {}]   ;;  %s330_s1 = inlined_call_operand.hbm [shape: bf16[128,128], index: 1, kind: input, shape index: {}]   ;;  %s331_s2 = inlined_call_operand.vmem [shape: f32[1,128], index: 2, kind: input, shape index: {}]   ;;  %s332_s3 = inlined_call_operand.hbm [shape: f32[16,128], index: 3, kind: output, shape index: {}]  }
   0x1   :  { %9 = vsyncpa [#allocation6], 0 }
   0x2   :  { %10 = vsyncpa [#allocation4], 0  ;;  %s15_s14 = sshll.u32 %s329_s0, 4  ;;  %s290_s15 = smov [#allocation2]   ;;  %s16_s14 = int_to_ptr.hbm [resolvable:$true] %s15_s14 }
   0x3   :  { %s17_s16 = sshll.u32 %s290_s15, 4  ;;  %s28_s19 = sshll.u32 %s330_s1, 4  ;;  %s18_s16 = int_to_ptr.vmem [resolvable:$true] %s17_s16  ;;  %s29_s19 = int_to_ptr.hbm [resolvable:$true] %s28_s19 }
   0x4   :  { %s291_s20 = smov 64   ;;  %s292_s21 = smov 4  }
   0x5   :  { %23 = dma.hbm_to_vmem [thread:$0]  %s16_s14, 128, %s18_s16, [#allocation3], %s291_s20, %s291_s20, %s292_s21  }
   0x6   :  { %s293_s22 = smov [#allocation5]  }
   0x7   :  { %s30_s23 = sshll.u32 %s293_s22, 4  ;;  %s31_s23 = int_to_ptr.vmem [resolvable:$true] %s30_s23 }
   0x8   :  { %36 = dma.hbm_to_vmem [thread:$0]  %s29_s19, 1024, %s31_s23, [#allocation6], %s291_s20, %s291_s20, %s292_s21  }
   0x9   :  { %284 = dma.done.wait [#allocation3], 128  }
   0xa   :  { %285 = vsyncadd [#allocation3], 4294967168 }
   0xb   :  { %286 = dma.done.wait [#allocation6], 1024  }
   0xc   :  { %287 = vsyncadd [#allocation6], 4294966272  ;;  %v203_v0 = vld [vmem:[#allocation5 + $0x38] sm:$0xff]  ;;  %v202_v1 = vld [vmem:[#allocation5 + $0x30] sm:$0xff]  ;;  %s294_s24 = smov [#allocation7]   ;;  %s145_s28 = sshll.u32 %s332_s3, 4  ;;  %s146_s28 = int_to_ptr.hbm [resolvable:$true] %s145_s28 }
   0xd   :  { %123 = vmatpush.bf16.msra.mxu0 %v203_v0  ;;  %v201_v2 = vld [vmem:[#allocation5 + $0x28] sm:$0xff]  ;;  %v200_v3 = vld [vmem:[#allocation5 + $0x20] sm:$0xff]  ;;  %v199_v4 = vld [vmem:[#allocation5 + $0x18] sm:$0xff]  ;;  %s143_s25 = sshll.u32 %s294_s24, 4  ;;  %s295_s29 = smov 128   ;;  %s144_s25 = int_to_ptr.vmem [resolvable:$true] %s143_s25 }
   0xe   :  { %v198_v5 = vld [vmem:[#allocation5 + $0x10] sm:$0xff]  ;;  %v197_v6 = vld [vmem:[#allocation5 + $0x8] sm:$0xff]  ;;  %v196_v7 = vld [vmem:[#allocation5] sm:$0xff]  ;;  %s296_s30 = smov 8  }
   0xf   :  { %v195_v8 = vld [vmem:[#allocation2] sm:$0xff] }
  0x10   :  { %v211_v9 = vld [vmem:[%s331_s2] ss:$0 sm:$0xff] }
  0x11   :  { %124 = vmatpush.bf16.msra.mxu0 %v202_v1 }
  0x15   :  { %125 = vmatpush.bf16.msra.mxu0 %v201_v2 }
  0x19   :  { %126 = vmatpush.bf16.msra.mxu0 %v200_v3 }
  0x1d   :  { %127 = vmatpush.bf16.msra.mxu0 %v199_v4 }
  0x21   :  { %128 = vmatpush.bf16.msra.mxu0 %v198_v5 }
  0x25   :  { %129 = vmatpush.bf16.msra.mxu0 %v197_v6 }
  0x29   :  { %130 = vmatpush.bf16.msra.mxu0 %v196_v7 }
  0x2c   :  { %131 = vmatmul.bf16.vlgmr.msra.gmra.mxu0 %v195_v8 }
  0xa9   :  { %v132_v10 = vpop.f32.mrf.mxu0 }
  0xaa   :  { %v133_v11 = vadd.f32 %v211_v9, %v132_v10 }
  0xac   :  { %137 = vst [vmem:[#allocation7] sm:$0xff] %v133_v11 }
  0xb1   :  { %v134_v12 = vpop.f32.mrf.mxu0 }
  0xb2   :  { %v135_v13 = vadd.f32 %v211_v9, %v134_v12 }
  0xb4   :  { %138 = vst [vmem:[#allocation7 + $0x8] sm:$0xff] %v135_v13 }
  0xb5   :  { %151 = dma.vmem_to_hbm [thread:$0]  %s144_s25, 256, %s146_s28, [#allocation4], %s295_s29, %s295_s29, %s296_s30  }
  0xb6   :  { %288 = dma.done.wait [#allocation4], 256  }
  0xb7   :  { %289 = vsyncadd [#allocation4], 4294967040 }
  0xb8   :  { %156 = vsyncpa [#allocation3], 1 }
  0xb9   :  { %157 = vsyncpa [#allocation6], 1 }
  0xba   :  { %158 = vsyncpa [#allocation4], 1 }

</bundles_post_ra>
